<compile_context>
chip_gen: v7x
topology: tpu7x:2x2x1
jax: 0.10.0
libtpu: 0.0.40
codegen_flags: <defaults>
</compile_context>

<pallas_src>
import functools

import jax
import jax.numpy as jnp
from jax import lax
from jax.experimental import pallas as pl
from jax.experimental.pallas import tpu as pltpu


def _baseball_kernel(bi_ref, pi_ref, bt_ref, pt_ref, bias_ref, o_ref):
    """One batch tile: in-kernel gather-add via one-hot MXU matmuls.

    bi_ref  : (TB, 1)  int32  batter indices for this tile
    pi_ref  : (TB, 1)  int32  pitcher indices for this tile
    bt_ref  : (NB, O)  f32    precomputed sigmoid(batter_emb)  @ W[:, :V].T (resident)
    pt_ref  : (NP, O)  f32    precomputed sigmoid(pitcher_emb) @ W[:, V:].T (resident)
    bias_ref: (1, O)   f32    fc bias (resident)
    o_ref   : (TB, O)  f32
    """
    tb = bi_ref.shape[0]
    nb = bt_ref.shape[0]
    npit = pt_ref.shape[0]
    # One-hot row selection (Mosaic's arbitrary dynamic gather is unreliable;
    # one_hot @ table on the MXU is robust and trivial at these dims).
    b_onehot = (lax.broadcasted_iota(jnp.int32, (tb, nb), 1)
                == bi_ref[...]).astype(jnp.float32)
    p_onehot = (lax.broadcasted_iota(jnp.int32, (tb, npit), 1)
                == pi_ref[...]).astype(jnp.float32)
    o_ref[...] = (
        jnp.dot(b_onehot, bt_ref[...], preferred_element_type=jnp.float32)
        + jnp.dot(p_onehot, pt_ref[...], preferred_element_type=jnp.float32)
        + bias_ref[...]
    )


def prepare_inference_params(params):
    """One-time parameter prep: collapse sigmoid + fc into per-player output rows."""
    num_outcomes, fan_in = params["fc_weight"].shape
    vec_size = fan_in // 2
    w = params["fc_weight"].astype(jnp.float32)
    hi = jax.lax.Precision.HIGHEST
    b_out = jnp.dot(jax.nn.sigmoid(params["batter_embedding"].astype(jnp.float32)),
                    w[:, :vec_size].T, precision=hi)          # (num_batters, O)
    p_out = jnp.dot(jax.nn.sigmoid(params["pitcher_embedding"].astype(jnp.float32)),
                    w[:, vec_size:].T, precision=hi)          # (num_pitchers, O)
    return {
        "batter_out": b_out,
        "pitcher_out": p_out,
        "bias2d": params["fc_bias"].reshape(1, num_outcomes).astype(jnp.float32),
    }


def _round_up(x, m):
    return (x + m - 1) // m * m


@functools.partial(jax.jit, static_argnames=("tile_b",))
def baseball_forward(batter_idx, pitcher_idx, prep, tile_b=1024):
    """Forward pass matching the PyTorch BaseballModel.

    batter_idx, pitcher_idx: integer arrays that flatten to (B,).
    prep: output of prepare_inference_params.
    Returns float32 (B, num_outcomes).
    """
    b_out = prep["batter_out"]       # (num_batters,  O) f32, resident
    p_out = prep["pitcher_out"]      # (num_pitchers, O) f32, resident
    bias2d = prep["bias2d"]          # (1, O) f32, resident
    num_outcomes = b_out.shape[1]

    bi = batter_idx.reshape(-1).astype(jnp.int32)
    pi = pitcher_idx.reshape(-1).astype(jnp.int32)
    batch = bi.shape[0]

    row_align = 8                    # int32 index / f32 output sublane alignment
    tb = min(tile_b, _round_up(batch, row_align))
    tb = _round_up(tb, row_align)
    b_pad = _round_up(batch, tb)
    if b_pad != batch:
        bi = jnp.pad(bi, (0, b_pad - batch))   # pad with index 0 (harmless rows)
        pi = jnp.pad(pi, (0, b_pad - batch))

    bi2 = bi.reshape(b_pad, 1)
    pi2 = pi.reshape(b_pad, 1)

    grid = (pl.cdiv(b_pad, tb),)
    out = pl.pallas_call(
        _baseball_kernel,
        out_shape=jax.ShapeDtypeStruct((b_pad, num_outcomes), jnp.float32),
        grid_spec=pltpu.PrefetchScalarGridSpec(
            num_scalar_prefetch=0,
            grid=grid,
            in_specs=[
                pl.BlockSpec((tb, 1), lambda i: (i, 0)),           # batter idx (tiled)
                pl.BlockSpec((tb, 1), lambda i: (i, 0)),           # pitcher idx (tiled)
                pl.BlockSpec(b_out.shape, lambda i: (0, 0)),       # batter table (resident)
                pl.BlockSpec(p_out.shape, lambda i: (0, 0)),       # pitcher table (resident)
                pl.BlockSpec((1, num_outcomes), lambda i: (0, 0)),  # bias (resident)
            ],
            out_specs=pl.BlockSpec((tb, num_outcomes), lambda i: (i, 0)),
        ),
        compiler_params=pltpu.CompilerParams(
            # Independent batch tiles: parallel -> megacore sharding on v7x.
            dimension_semantics=("parallel",)),
    )(bi2, pi2, b_out, p_out, bias2d)
    return out[:batch]


def init_params(key, num_batters, num_pitchers, vec_size, num_outcomes):
    """Deterministic parameter init matching PyTorch default initializers."""
    k1, k2, k3, k4 = jax.random.split(key, 4)
    # nn.Embedding default: N(0, 1)
    batter_embedding = jax.random.normal(k1, (num_batters, vec_size), jnp.float32)
    pitcher_embedding = jax.random.normal(k2, (num_pitchers, vec_size), jnp.float32)
    # nn.Linear default: U(-1/sqrt(fan_in), 1/sqrt(fan_in))
    fan_in = vec_size * 2
    bound = 1.0 / (fan_in ** 0.5)
    fc_weight = jax.random.uniform(
        k3, (num_outcomes, fan_in), jnp.float32, minval=-bound, maxval=bound)
    fc_bias = jax.random.uniform(
        k4, (num_outcomes,), jnp.float32, minval=-bound, maxval=bound)
    return {
        "batter_embedding": batter_embedding,
        "pitcher_embedding": pitcher_embedding,
        "fc_weight": fc_weight,
        "fc_bias": fc_bias,
    }


def _reference_forward(batter_idx, pitcher_idx, params):
    """Pure-JAX reference mirroring the PyTorch forward (full f32)."""
    b_emb = jax.nn.sigmoid(params["batter_embedding"][batter_idx.reshape(-1)])
    p_emb = jax.nn.sigmoid(params["pitcher_embedding"][pitcher_idx.reshape(-1)])
    combined = jnp.concatenate([b_emb, p_emb], axis=1)
    return jnp.dot(combined, params["fc_weight"].T,
                   precision=jax.lax.Precision.HIGHEST) + params["fc_bias"]


if __name__ == "__main__":
    num_batters = 64
    num_pitchers = 48
    vec_size = 32
    num_outcomes = 8
    batch = 40          # deliberately not a multiple of the tile -> exercises padding

    key = jax.random.PRNGKey(0)
    pkey, bkey, ikey = jax.random.split(key, 3)
    params = init_params(pkey, num_batters, num_pitchers, vec_size, num_outcomes)
    prep = prepare_inference_params(params)   # one-time: per-player output rows + bias

    batter_idx = jax.random.randint(bkey, (batch,), 0, num_batters, dtype=jnp.int32)
    pitcher_idx = jax.random.randint(ikey, (batch,), 0, num_pitchers, dtype=jnp.int32)

    # tile_b=16 -> 3 grid steps over the padded 48-row batch (pipelining + padding
    # exercised).  Use the default tile_b=1024 for real workloads.
    out = baseball_forward(batter_idx, pitcher_idx, prep, tile_b=16)
    out = jax.block_until_ready(out)
    assert out.shape == (batch, num_outcomes)

    # Everything is f32 end-to-end now; small slack for MXU pass decomposition.
    ref_f32 = _reference_forward(batter_idx, pitcher_idx, params)
    assert jnp.allclose(out, ref_f32, atol=5e-3, rtol=5e-3), float(
        jnp.max(jnp.abs(out - ref_f32)))

    print("KERNEL_OK")
</pallas_src>

<mosaic_0001>
module attributes {stable_mosaic.version = 11 : i64} {
  func.func @_baseball_kernel(%arg0: i32, %arg1: memref<16x1xi32, #tpu.memory_space<vmem>>, %arg2: memref<16x1xi32, #tpu.memory_space<vmem>>, %arg3: memref<64x8xf32, #tpu.memory_space<vmem>>, %arg4: memref<48x8xf32, #tpu.memory_space<vmem>>, %arg5: memref<1x8xf32, #tpu.memory_space<vmem>>, %arg6: memref<16x8xf32, #tpu.memory_space<vmem>>) attributes {dimension_semantics = [#tpu.dimension_semantics<parallel>], iteration_bounds = array<i64: 3>, scalar_prefetch = 0 : i64, scratch_operands = 0 : i64, tpu.core_type = #tpu.core_type<tc>, window_params = [{transform_indices = @transform_0, window_bounds = array<i64: 16, 1>}, {transform_indices = @transform_1, window_bounds = array<i64: 16, 1>}, {pipeline_mode = #tpu.pipeline_mode<synchronous>, transform_indices = @transform_2, window_bounds = array<i64: 64, 8>}, {pipeline_mode = #tpu.pipeline_mode<synchronous>, transform_indices = @transform_3, window_bounds = array<i64: 48, 8>}, {pipeline_mode = #tpu.pipeline_mode<synchronous>, transform_indices = @transform_4, window_bounds = array<i64: 1, 8>}, {transform_indices = @transform_5, window_bounds = array<i64: 16, 8>}]} {
    %0 = tpu.iota {dimensions = array<i32: 1>} : vector<16x64xi32>
    %c0 = arith.constant 0 : index
    %c0_0 = arith.constant 0 : index
    %1 = vector.load %arg1[%c0, %c0_0] : memref<16x1xi32, #tpu.memory_space<vmem>>, vector<16x1xi32>
    %2 = vector.broadcast %1 : vector<16x1xi32> to vector<16x64xi32>
    %3 = arith.cmpi eq, %0, %2 : vector<16x64xi32>
    %4 = arith.extui %3 : vector<16x64xi1> to vector<16x64xi32>
    %5 = arith.sitofp %4 : vector<16x64xi32> to vector<16x64xf32>
    %6 = tpu.iota {dimensions = array<i32: 1>} : vector<16x48xi32>
    %c0_1 = arith.constant 0 : index
    %c0_2 = arith.constant 0 : index
    %7 = vector.load %arg2[%c0_1, %c0_2] : memref<16x1xi32, #tpu.memory_space<vmem>>, vector<16x1xi32>
    %8 = vector.broadcast %7 : vector<16x1xi32> to vector<16x48xi32>
    %9 = arith.cmpi eq, %6, %8 : vector<16x48xi32>
    %10 = arith.extui %9 : vector<16x48xi1> to vector<16x48xi32>
    %11 = arith.sitofp %10 : vector<16x48xi32> to vector<16x48xf32>
    %c0_3 = arith.constant 0 : index
    %c0_4 = arith.constant 0 : index
    %12 = vector.load %arg3[%c0_3, %c0_4] : memref<64x8xf32, #tpu.memory_space<vmem>>, vector<64x8xf32>
    %cst = arith.constant dense<0.000000e+00> : vector<16x8xf32>
    %13 = tpu.matmul %5, %12, %cst {dimension_numbers = #tpu.dot_dimension_numbers<[1], [0], [0], [1], [0, 0, 1, 1], [], []>} : vector<16x64xf32>, vector<64x8xf32>, vector<16x8xf32> -> vector<16x8xf32>
    %c0_5 = arith.constant 0 : index
    %c0_6 = arith.constant 0 : index
    %14 = vector.load %arg4[%c0_5, %c0_6] : memref<48x8xf32, #tpu.memory_space<vmem>>, vector<48x8xf32>
    %cst_7 = arith.constant dense<0.000000e+00> : vector<16x8xf32>
    %15 = tpu.matmul %11, %14, %cst_7 {dimension_numbers = #tpu.dot_dimension_numbers<[1], [0], [0], [1], [0, 0, 1, 1], [], []>} : vector<16x48xf32>, vector<48x8xf32>, vector<16x8xf32> -> vector<16x8xf32>
    %16 = arith.addf %13, %15 : vector<16x8xf32>
    %c0_8 = arith.constant 0 : index
    %c0_9 = arith.constant 0 : index
    %17 = vector.load %arg5[%c0_8, %c0_9] : memref<1x8xf32, #tpu.memory_space<vmem>>, vector<1x8xf32>
    %18 = vector.broadcast %17 : vector<1x8xf32> to vector<16x8xf32>
    %19 = arith.addf %16, %18 : vector<16x8xf32>
    %c0_10 = arith.constant 0 : index
    %c0_11 = arith.constant 0 : index
    %20 = vector.load %arg6[%c0_10, %c0_11] : memref<16x8xf32, #tpu.memory_space<vmem>>, vector<16x8xf32>
    tpu.vector_store %arg6[%c0_10, %c0_11], %19 {strides = array<i32>} : memref<16x8xf32, #tpu.memory_space<vmem>>, vector<16x8xf32>,
    return
  }
  func.func @transform_0(%arg0: i32) -> (i32, i32) {
    %c0_i32 = arith.constant 0 : i32
    %c0_i32_0 = arith.constant 0 : i32
    return %arg0, %c0_i32 : i32, i32
  }
  func.func @transform_1(%arg0: i32) -> (i32, i32) {
    %c0_i32 = arith.constant 0 : i32
    %c0_i32_0 = arith.constant 0 : i32
    return %arg0, %c0_i32 : i32, i32
  }
  func.func @transform_2(%arg0: i32) -> (i32, i32) {
    %c0_i32 = arith.constant 0 : i32
    %c0_i32_0 = arith.constant 0 : i32
    %c0_i32_1 = arith.constant 0 : i32
    return %c0_i32, %c0_i32_0 : i32, i32
  }
  func.func @transform_3(%arg0: i32) -> (i32, i32) {
    %c0_i32 = arith.constant 0 : i32
    %c0_i32_0 = arith.constant 0 : i32
    %c0_i32_1 = arith.constant 0 : i32
    return %c0_i32, %c0_i32_0 : i32, i32
  }
  func.func @transform_4(%arg0: i32) -> (i32, i32) {
    %c0_i32 = arith.constant 0 : i32
    %c0_i32_0 = arith.constant 0 : i32
    %c0_i32_1 = arith.constant 0 : i32
    return %c0_i32, %c0_i32_0 : i32, i32
  }
  func.func @transform_5(%arg0: i32) -> (i32, i32) {
    %c0_i32 = arith.constant 0 : i32
    %c0_i32_0 = arith.constant 0 : i32
    return %arg0, %c0_i32 : i32, i32
  }
}

</mosaic_0001>

<bundles_post_ra>
// kernel: baseball_forward.1
= control target key start
LH: loop header
LB: loop body
LE: loop exit
PB: predicated region body
PF: predicated region fallthrough
CT: control target
= control target key end

     0   :  { %s694_s18 = smov 0   ;;  %s764_s0 = inlined_call_operand.vmem [shape: s32[48,1], index: 0, kind: input, shape index: {}]   ;;  %s765_s1 = inlined_call_operand.vmem [shape: s32[48,1], index: 1, kind: input, shape index: {}]   ;;  %s766_s2 = inlined_call_operand.vmem [shape: f32[64,8], index: 2, kind: input, shape index: {}]   ;;  %s767_s3 = inlined_call_operand.vmem [shape: f32[48,8], index: 3, kind: input, shape index: {}]   ;;  %s768_s4 = inlined_call_operand.vmem [shape: f32[1,8], index: 4, kind: input, shape index: {}]   ;;  %s769_s5 = inlined_call_operand.vmem [shape: f32[48,8], index: 5, kind: output, shape index: {}]  }
   0x1 LB: > { %s538_s19 = sadd.s32 4294967295, %s660_s18   ;;  %p542_p0 = scmp.ge.s32.totalorder %s660_s18, 1  ;;  %s660_s18 = sphi %s694_s18, %s15_s18  }
   0x2   : > { %p199_p1 = scmp.lt.s32.totalorder %s660_s18, 4 }
   0x4   : > { %p200_p2 = pnand %p542_p0, %p199_p1 }
   0x5   : > { %s543_s20 = sshll.u32 (!%p200_p2), %s538_s19, 1  ;;  %v280_v0 = vld [vmem:[%s766_s2] sm:$0xff] (!%p200_p2)  ;;  %v281_v1 = vld [vmem:[%s766_s2 + $0x8] sm:$0xff] (!%p200_p2)  ;;  %v282_v2 = vld [vmem:[%s766_s2 + $0x10] sm:$0xff] (!%p200_p2)  ;;  %v662_v3 = vmov (!%p200_p2), 0   ;;  %v250_v26 = vlaneseq (!%p200_p2)  ;;  %vm376_vm0 = vcmask (!%p200_p2), 523264  }
   0x6   : > { %203 = sbr.rel (%p200_p2) target bundleno = 370 (0x172), region = 40  ;;  %653 = vset.pattern.permute.xlu1 (!%p200_p2), %v662_v3  ;;  %652 = vset.pattern.permute.xlu0 (!%p200_p2), %v662_v3  ;;  %p233_p3 = scmp.lt.s32.totalorder (!%p200_p2), %s543_s20, 5  ;;  %v624_v4 = vpack.c.bf16 (!%p200_p2), %v281_v1, %v280_v0  ;;  %v283_v5 = vld [vmem:[%s766_s2 + $0x18] sm:$0xff] (!%p200_p2)  ;;  %v288_v6 = vld [vmem:[%s767_s3] sm:$0xff] (!%p200_p2)  ;;  %v289_v7 = vld [vmem:[%s767_s3 + $0x8] sm:$0xff] (!%p200_p2)  ;;  %v663_v30 = vmov (!%p200_p2), 0.0  }
   0x7   : > { %v628_v8 = vpack.c.bf16 (!%p200_p2), %v283_v5, %v282_v2  ;;  %v612_v9 = vpack.c.bf16 (!%p200_p2), %v289_v7, %v288_v6  ;;  %v290_v10 = vld [vmem:[%s767_s3 + $0x10] sm:$0xff] (!%p200_p2)  ;;  %v284_v11 = vld [vmem:[%s766_s2 + $0x20] sm:$0xff] (!%p200_p2)  ;;  %v285_v12 = vld [vmem:[%s766_s2 + $0x28] sm:$0xff] (!%p200_p2)  ;;  %v251_v27 = vand.u32 (!%p200_p2), 127, %v250_v26  ;;  %vm294_vm3 = vcmask (!%p200_p2), 392192  }
   0x8   : > { %625 = vmatprep.subr.bf16.mxu0 (!%p200_p2), %v624_v4  ;;  %v291_v13 = vld [vmem:[%s767_s3 + $0x18] sm:$0xff] (!%p200_p2)  ;;  %v632_v15 = vpack.c.bf16 (!%p200_p2), %v285_v12, %v284_v11  ;;  %v286_v16 = vld [vmem:[%s766_s2 + $0x30] sm:$0xff] (!%p200_p2)  ;;  %v292_v20 = vld [vmem:[%s767_s3 + $0x20] sm:$0xff] (!%p200_p2)  ;;  %vm467_vm6 = vcmask (!%p200_p2), 64512  }
   0x9   : > { %627 = vmatpush3.bf16.msra.mxu0 (!%p200_p2), %v624_v4  ;;  %613 = vmatprep.subr.bf16.mxu1 (!%p200_p2), %v612_v9  ;;  %v616_v14 = vpack.c.bf16 (!%p200_p2), %v291_v13, %v290_v10  ;;  %v287_v19 = vld [vmem:[%s766_s2 + $0x38] sm:$0xff] (!%p200_p2)  ;;  %v293_v23 = vld [vmem:[%s767_s3 + $0x28] sm:$0xff] (!%p200_p2)  ;;  %v557_v41 = vld [vmem:[%s768_s4] ss:$0 sm:$0xff] (!%p200_p2) }
   0xa   : > { %629 = vmatprep.subr.bf16.mxu0 (!%p200_p2), %v628_v8  ;;  %615 = vmatpush3.bf16.msra.mxu1 (!%p200_p2), %v612_v9  ;;  %v636_v24 = vpack.c.bf16 (!%p200_p2), %v287_v19, %v286_v16  ;;  %v620_v25 = vpack.c.bf16 (!%p200_p2), %v293_v23, %v292_v20 }
   0xb   : > { %617 = vmatprep.subr.bf16.mxu1 (!%p200_p2), %v616_v14 }
   0xd   : > { %s771_s20 = smov (!%p233_p3, %s543_s20), 5  ;;  %631 = vmatpush3.bf16.msra.mxu0 %v628_v8 }
   0xe   : > { %s732_s16 = sshll.u32 %s771_s20, 3  ;;  %619 = vmatpush3.bf16.msra.mxu1 %v616_v14  ;;  %633 = vmatprep.subr.bf16.mxu0 %v632_v15 }
   0xf   : > { %s236_s21 = scalar_lea.vmem %s764_s0, %s732_s16  ;;  %s242_s20 = scalar_lea.vmem %s765_s1, %s732_s16  ;;  %621 = vmatprep.subr.bf16.mxu1 %v620_v25 }
  0x10   : > { %v253_v17 = vld [vmem:[%s236_s21 + $0x8] sm:$0xff]  ;;  %v252_v18 = vld [vmem:[%s236_s21] sm:$0xff]  ;;  %s248_s11 = scalar_lea.vmem %s769_s5, %s732_s16 }
  0x11   : > { %258 = vperm.xlu1 %653, %v253_v17   ;;  %255 = vperm.xlu0 %652, %v252_v18   ;;  %v267_v21 = vld [vmem:[%s242_s20 + $0x8] sm:$0xff]  ;;  %v266_v22 = vld [vmem:[%s242_s20] sm:$0xff] }
  0x12   : > { %635 = vmatpush3.bf16.msra.mxu0 %v632_v15  ;;  %623 = vmatpush3.bf16.msra.mxu1 %v620_v25 }
  0x13   : > { %637 = vmatprep.subr.bf16.mxu0 %v636_v24 }
  0x15   : > { %272 = vperm.xlu1 %653, %v267_v21   ;;  %269 = vperm.xlu0 %652, %v266_v22  }
  0x16   : > { %639 = vmatpush3.bf16.msra.mxu0 %v636_v24 }
  0x90   : > { %v259_v28 = vpop.permute.xlu1 %258  ;;  %v256_v29 = vpop.permute.xlu0 %255 }
  0x91   : > { %vm261_vm1 = vcmp.eq.s32.totalorder %v251_v27, %v259_v28  ;;  %vm260_vm2 = vcmp.eq.s32.totalorder %v251_v27, %v256_v29 }
  0x92   : > { %v550_v31 = vsel %vm261_vm1, 1.0, %v663_v30  ;;  %v549_v32 = vsel %vm260_vm2, 1.0, %v663_v30 }
  0x93   : > { %609 = vmatprep.mubr.msk.f32.mxu0 %vm376_vm0, %v549_v32 }
  0x94   : > { %v273_v33 = vpop.permute.xlu1 %272  ;;  %610 = vmatmul.mubr.msk.f32.vlgmr.msra.gmra.mrb[0].mxu0 %vm376_vm0, %v550_v31  ;;  %v270_v34 = vpop.permute.xlu0 %269 }
  0x95   : > { %vm275_vm4 = vcmp.eq.s32.totalorder %v251_v27, %v273_v33  ;;  %vm274_vm5 = vcmp.eq.s32.totalorder %v251_v27, %v270_v34 }
  0x96   : > { %v552_v35 = vsel %vm275_vm4, 1.0, %v663_v30  ;;  %v551_v36 = vsel %vm274_vm5, 1.0, %v663_v30 }
  0x97   : > { %590 = vmatprep.mubr.msk.f32.mxu1 %vm294_vm3, %v551_v36 }
  0x98   : > { %591 = vmatmul.mubr.msk.f32.vlgmr.msra.gmra.mrb[0].mxu1 %vm294_vm3, %v552_v35 }
 0x167   : > { %v611_v37 = vpop.f32.mrb[0].mxu0 }
 0x168   : > { %v449_v38 = vpop.f32.mrb[1].mxu0 }
 0x16b   : > { %v592_v39 = vpop.f32.mrb[0].mxu1 }
 0x16c   : > { %v455_v40 = vadd.f32 %v611_v37, %v592_v39  ;;  %v367_v42 = vpop.f32.mrb[1].mxu1 }
 0x16d   : > { %v450_v43 = vadd.f32 %v449_v38, %v367_v42 }
 0x16e   : > { %v466_v45 = vadd.f32 %v557_v41, %v455_v40 }
 0x16f   : > { %v465_v44 = vadd.f32 %v557_v41, %v450_v43 }
 0x170   : > { %469 = vst.msk [vmem:[%s248_s11 + $0x8] sm:$0xff] %vm467_vm6, %v466_v45 }
 0x171   : > { %468 = vst.msk [vmem:[%s248_s11] sm:$0xff] %vm467_vm6, %v465_v44 }
 0x172 PF: > { %s15_s18 = sadd.s32 1, %s660_s18  }
 0x173   : > { %p12_p4 = scmp.ge.s32.totalorder %s15_s18, 5  }
 0x175   :  { %14 = sbr.rel (!%p12_p4) target bundleno = 1 (0x1), region = 73 }

</bundles_post_ra>
